<compile_context>
chip_gen: v7x
topology: tpu7x:2x2x1
jax: 0.10.0
libtpu: 0.0.40
codegen_flags: <defaults>
</compile_context>

<pallas_src>
import functools

import jax
import jax.numpy as jnp
from jax.experimental import pallas as pl
from jax.experimental.pallas import tpu as pltpu

REDUCE_F = 1
HIDDEN = 128 // REDUCE_F


def _edge_encoder_kernel(x_ref, w1_ref, b1_ref, w2_ref, b2_ref, o_ref, *, chunk):
    # x_ref:  (block, P*in_dim)        w1_ref: (P*in_dim, P*hidden)
    # b1_ref: (1, P*hidden)            w2_ref: (P*hidden, P*out_dim)
    # b2_ref: (1, P*out_dim)           o_ref:  (block, P*out_dim)
    #
    # Process the (large, DMA-sized) block in sub-chunks of `chunk` packed rows
    # so the f32 hidden activation stays ~1 MiB of VMEM at a time.
    n_chunks = o_ref.shape[0] // chunk  # static; block is a multiple of chunk

    def body(c, carry):
        r0 = pl.multiple_of(c * chunk, chunk)
        x = x_ref[pl.ds(r0, chunk), :]

        # Linear 1 (MXU) + bias.
        h = jnp.dot(x, w1_ref[...], preferred_element_type=jnp.float32) + b1_ref[...]

        # ELU (alpha = 1): h if h > 0 else exp(h) - 1.  Guard exp with
        # min(h, 0) so the discarded positive branch never produces inf.
        h = jnp.where(h > 0.0, h, jnp.exp(jnp.minimum(h, 0.0)) - 1.0)

        # Linear 2 (MXU) + bias; lane-dense (P*out_dim == 128) store.
        y = jnp.dot(h, w2_ref[...], preferred_element_type=jnp.float32) + b2_ref[...]
        o_ref[pl.ds(r0, chunk), :] = y.astype(o_ref.dtype)
        return carry

    jax.lax.fori_loop(0, n_chunks, body, 0)


def _pick_pack(out_dim):
    """Smallest pack factor P so that P*out_dim is lane-dense (multiple of 128).

    Kept minimal on purpose (v5e feedback): larger P inflates the kron'd
    weights / MXU K-chunks with zeros for no bandwidth gain.
    """
    for p in (1, 2, 4, 8):
        if (p * out_dim) % 128 == 0:
            return p
    return 1


def _pick_tiles(r, pack, tile_n):
    """Pick (block, chunk) in packed rows.

    block : rows per grid step (the pipelined HBM DMA tile), multiple of chunk.
    chunk : rows per in-kernel matmul sub-chunk (bounds the f32 h scratch).
    Keeps >= 2 grid steps when possible so megacore can split rows.
    """
    align = 8
    chunk0 = 512  # ~1 MiB f32 hidden activation per sub-chunk (pack*hidden=512)

    req = max(align, (tile_n // pack // align) * align)
    block = min(req, r)
    # If a single block would cover everything but there is enough work,
    # split into >= 2 grid steps for the 2-TC generations.
    if block == r and r >= 2 * align:
        block = pl.cdiv(pl.cdiv(r, 2), align) * align
    chunk = min(chunk0, block)
    block = max(chunk, (block // chunk) * chunk)
    return block, chunk


@functools.partial(jax.jit, static_argnames=("tile_n",))
def edge_encoder(x, w1, b1, w2, b2, *, tile_n=16384):
    """x: [N, in_dim] -> [N, out_dim].  Semantics of torch EdgeEncoder.forward.

    Weights are stored pre-transposed as [in_features, out_features] so the
    kernel computes x @ W + b (== torch's x @ W.T + b).

    tile_n: requested rows per grid step (sweepable; ~8192 v5e, 16384 v6e,
    32768 v7x all stay well under the scoped-VMEM limit thanks to the
    in-kernel sub-chunking).
    """
    n, in_dim = x.shape
    hidden = w1.shape[1]
    out_dim = w2.shape[1]
    dt_size = jnp.dtype(x.dtype).itemsize

    pack = _pick_pack(out_dim)
    align_rows = 8 * pack

    # Pad rows only up to the packing/sublane alignment (<= 8*pack-1 rows).
    # For typical N (multiple of 8*pack) this is a no-op, so no wrapper-side
    # HBM copy of x and no output slice copy are incurred; the ragged grid
    # tail is handled by Pallas partial-block masking instead of padding.
    n_pad = pl.cdiv(n, align_rows) * align_rows
    if n_pad != n:
        x = jnp.pad(x, ((0, n_pad - n), (0, 0)))

    # Lane-pack `pack` consecutive rows into one packed row (free reshape).
    x_p = x.reshape(n_pad // pack, pack * in_dim)

    # Block-diagonal weights / tiled biases so packed rows stay independent.
    eye = jnp.eye(pack, dtype=w1.dtype)
    w1_p = jnp.kron(eye, w1)                        # (pack*in_dim, pack*hidden)
    w2_p = jnp.kron(eye, w2)                        # (pack*hidden, pack*out_dim)
    b1_p = jnp.tile(b1, pack).reshape(1, pack * hidden)
    b2_p = jnp.tile(b2, pack).reshape(1, pack * out_dim)

    r = n_pad // pack                               # packed rows
    block, chunk = _pick_tiles(r, pack, tile_n)
    grid = (pl.cdiv(r, block),)                     # last block may be partial

    cost = pl.CostEstimate(
        flops=2 * r * ((pack * in_dim) * (pack * hidden)
                       + (pack * hidden) * (pack * out_dim)),
        transcendentals=n_pad * hidden,
        bytes_accessed=(n_pad * (in_dim + out_dim)
                        + (pack * in_dim) * (pack * hidden)
                        + (pack * hidden) * (pack * out_dim)
                        + pack * (hidden + out_dim)) * dt_size,
    )

    out_p = pl.pallas_call(
        functools.partial(_edge_encoder_kernel, chunk=chunk),
        out_shape=jax.ShapeDtypeStruct((r, pack * out_dim), x.dtype),
        grid_spec=pl.GridSpec(
            grid=grid,
            in_specs=[
                pl.BlockSpec((block, pack * in_dim), lambda i: (i, 0)),           # x tile
                pl.BlockSpec((pack * in_dim, pack * hidden), lambda i: (0, 0)),   # W1 (resident)
                pl.BlockSpec((1, pack * hidden), lambda i: (0, 0)),               # b1
                pl.BlockSpec((pack * hidden, pack * out_dim), lambda i: (0, 0)),  # W2 (resident)
                pl.BlockSpec((1, pack * out_dim), lambda i: (0, 0)),              # b2
            ],
            out_specs=pl.BlockSpec((block, pack * out_dim), lambda i: (i, 0)),
        ),
        compiler_params=pltpu.CompilerParams(
            dimension_semantics=("parallel",),
            # Explicit scoped-VMEM budget: well above what the kernel needs
            # even at tile_n=32768, and below v7x's 64 MiB physical VMEM.
            vmem_limit_bytes=48 * 1024 * 1024,
        ),
        cost_estimate=cost,
    )(x_p, w1_p, b1_p, w2_p, b2_p)

    # Unpack lanes back to rows (free row-major view); slice only if we padded.
    out = out_p.reshape(n_pad, out_dim)
    if n_pad != n:
        out = out[:n]
    return out


def _reference(x, w1, b1, w2, b2):
    h = x @ w1 + b1
    h = jnp.where(h > 0.0, h, jnp.exp(jnp.minimum(h, 0.0)) - 1.0)
    return h @ w2 + b2


if __name__ == "__main__":
    # Small shapes consistent with the module: edge features -> encoded edges.
    N, IN_DIM, OUT_DIM = 16, 8, 32

    key = jax.random.PRNGKey(0)
    kx, kw1, kb1, kw2, kb2 = jax.random.split(key, 5)

    x = jax.random.normal(kx, (N, IN_DIM), dtype=jnp.float32)

    # Deterministic parameter init (torch-Linear-like uniform fan-in scaling),
    # stored pre-transposed as [in_features, out_features].
    lim1 = 1.0 / jnp.sqrt(IN_DIM)
    w1 = jax.random.uniform(kw1, (IN_DIM, HIDDEN), jnp.float32, -lim1, lim1)
    b1 = jax.random.uniform(kb1, (HIDDEN,), jnp.float32, -lim1, lim1)
    lim2 = 1.0 / jnp.sqrt(HIDDEN)
    w2 = jax.random.uniform(kw2, (HIDDEN, OUT_DIM), jnp.float32, -lim2, lim2)
    b2 = jax.random.uniform(kb2, (OUT_DIM,), jnp.float32, -lim2, lim2)

    out = edge_encoder(x, w1, b1, w2, b2)
    out = jax.block_until_ready(out)

    ref = _reference(x, w1, b1, w2, b2)
    assert out.shape == (N, OUT_DIM), out.shape
    assert jnp.allclose(out, ref, atol=1e-4, rtol=1e-4), "mismatch vs reference"

    print("KERNEL_OK")
</pallas_src>

<mosaic_0001>
module attributes {stable_mosaic.version = 11 : i64} {
  func.func @_edge_encoder_kernel(%arg0: i32, %arg1: memref<8x32xf32, #tpu.memory_space<vmem>>, %arg2: memref<32x512xf32, #tpu.memory_space<vmem>>, %arg3: memref<1x512xf32, #tpu.memory_space<vmem>>, %arg4: memref<512x128xf32, #tpu.memory_space<vmem>>, %arg5: memref<1x128xf32, #tpu.memory_space<vmem>>, %arg6: memref<8x128xf32, #tpu.memory_space<vmem>>) attributes {dimension_semantics = [#tpu.dimension_semantics<parallel>], iteration_bounds = array<i64: 1>, scalar_prefetch = 0 : i64, scratch_operands = 0 : i64, tpu.core_type = #tpu.core_type<tc>, window_params = [{transform_indices = @transform_0, window_bounds = array<i64: 8, 32>}, {pipeline_mode = #tpu.pipeline_mode<synchronous>, transform_indices = @transform_1, window_bounds = array<i64: 32, 512>}, {pipeline_mode = #tpu.pipeline_mode<synchronous>, transform_indices = @transform_2, window_bounds = array<i64: 1, 512>}, {pipeline_mode = #tpu.pipeline_mode<synchronous>, transform_indices = @transform_3, window_bounds = array<i64: 512, 128>}, {pipeline_mode = #tpu.pipeline_mode<synchronous>, transform_indices = @transform_4, window_bounds = array<i64: 1, 128>}, {transform_indices = @transform_5, window_bounds = array<i64: 8, 128>}]} {
    %c0_i32 = arith.constant 0 : i32
    %c8_i32 = arith.constant 8 : i32
    %0 = arith.muli %c0_i32, %c8_i32 : i32
    %1 = tpu.assume_multiple %0, 8 : i32
    %2 = arith.index_cast %1 : i32 to index
    %c0 = arith.constant 0 : index
    %3 = vector.load %arg1[%2, %c0] : memref<8x32xf32, #tpu.memory_space<vmem>>, vector<8x32xf32>
    %c0_0 = arith.constant 0 : index
    %c0_1 = arith.constant 0 : index
    %4 = vector.load %arg2[%c0_0, %c0_1] : memref<32x512xf32, #tpu.memory_space<vmem>>, vector<32x512xf32>
    %cst = arith.constant dense<0.000000e+00> : vector<8x512xf32>
    %5 = tpu.matmul %3, %4, %cst {dimension_numbers = #tpu.dot_dimension_numbers<[1], [0], [0], [1], [0, 0, 1, 1], [], []>} : vector<8x32xf32>, vector<32x512xf32>, vector<8x512xf32> -> vector<8x512xf32>
    %c0_2 = arith.constant 0 : index
    %c0_3 = arith.constant 0 : index
    %6 = vector.load %arg3[%c0_2, %c0_3] : memref<1x512xf32, #tpu.memory_space<vmem>>, vector<1x512xf32>
    %7 = vector.broadcast %6 : vector<1x512xf32> to vector<8x512xf32>
    %8 = arith.addf %5, %7 : vector<8x512xf32>
    %cst_4 = arith.constant 0.000000e+00 : f32
    %9 = vector.broadcast %cst_4 : f32 to vector<8x512xf32>
    %10 = arith.cmpf ogt, %8, %9 : vector<8x512xf32>
    %cst_5 = arith.constant 0.000000e+00 : f32
    %11 = vector.broadcast %cst_5 : f32 to vector<8x512xf32>
    %12 = arith.minimumf %8, %11 : vector<8x512xf32>
    %13 = math.exp %12 : vector<8x512xf32>
    %cst_6 = arith.constant 1.000000e+00 : f32
    %14 = vector.broadcast %cst_6 : f32 to vector<8x512xf32>
    %15 = arith.subf %13, %14 : vector<8x512xf32>
    %16 = arith.select %10, %8, %15 : vector<8x512xi1>, vector<8x512xf32>
    %c0_7 = arith.constant 0 : index
    %c0_8 = arith.constant 0 : index
    %17 = vector.load %arg4[%c0_7, %c0_8] : memref<512x128xf32, #tpu.memory_space<vmem>>, vector<512x128xf32>
    %cst_9 = arith.constant dense<0.000000e+00> : vector<8x128xf32>
    %18 = tpu.matmul %16, %17, %cst_9 {dimension_numbers = #tpu.dot_dimension_numbers<[1], [0], [0], [1], [0, 0, 1, 1], [], []>} : vector<8x512xf32>, vector<512x128xf32>, vector<8x128xf32> -> vector<8x128xf32>
    %c0_10 = arith.constant 0 : index
    %c0_11 = arith.constant 0 : index
    %19 = vector.load %arg5[%c0_10, %c0_11] : memref<1x128xf32, #tpu.memory_space<vmem>>, vector<1x128xf32>
    %20 = vector.broadcast %19 : vector<1x128xf32> to vector<8x128xf32>
    %21 = arith.addf %18, %20 : vector<8x128xf32>
    %22 = arith.index_cast %1 : i32 to index
    %c0_12 = arith.constant 0 : index
    %23 = vector.load %arg6[%22, %c0_12] : memref<8x128xf32, #tpu.memory_space<vmem>>, vector<8x128xf32>
    tpu.vector_store %arg6[%22, %c0_12], %21 {strides = array<i32>} : memref<8x128xf32, #tpu.memory_space<vmem>>, vector<8x128xf32>,
    %c1_i32 = arith.constant 1 : i32
    return
  }
  func.func @transform_0(%arg0: i32) -> (i32, i32) {
    %c0_i32 = arith.constant 0 : i32
    %c0_i32_0 = arith.constant 0 : i32
    return %arg0, %c0_i32 : i32, i32
  }
  func.func @transform_1(%arg0: i32) -> (i32, i32) {
    %c0_i32 = arith.constant 0 : i32
    %c0_i32_0 = arith.constant 0 : i32
    %c0_i32_1 = arith.constant 0 : i32
    return %c0_i32, %c0_i32_0 : i32, i32
  }
  func.func @transform_2(%arg0: i32) -> (i32, i32) {
    %c0_i32 = arith.constant 0 : i32
    %c0_i32_0 = arith.constant 0 : i32
    %c0_i32_1 = arith.constant 0 : i32
    return %c0_i32, %c0_i32_0 : i32, i32
  }
  func.func @transform_3(%arg0: i32) -> (i32, i32) {
    %c0_i32 = arith.constant 0 : i32
    %c0_i32_0 = arith.constant 0 : i32
    %c0_i32_1 = arith.constant 0 : i32
    return %c0_i32, %c0_i32_0 : i32, i32
  }
  func.func @transform_4(%arg0: i32) -> (i32, i32) {
    %c0_i32 = arith.constant 0 : i32
    %c0_i32_0 = arith.constant 0 : i32
    %c0_i32_1 = arith.constant 0 : i32
    return %c0_i32, %c0_i32_0 : i32, i32
  }
  func.func @transform_5(%arg0: i32) -> (i32, i32) {
    %c0_i32 = arith.constant 0 : i32
    %c0_i32_0 = arith.constant 0 : i32
    return %arg0, %c0_i32 : i32, i32
  }
}

</mosaic_0001>

<bundles_post_ra>
// kernel: tile.18
= control target key start
LH: loop header
LB: loop body
LE: loop exit
PB: predicated region body
PF: predicated region fallthrough
CT: control target
= control target key end

     0   :  { %s22_s0 = inlined_call_operand.vmem [shape: f32[32], index: 0, kind: input, shape index: {}]   ;;  %s23_s1 = inlined_call_operand.vmem [shape: f32[4,32], index: 1, kind: output, shape index: {}]  }
   0x1   :  { %v4_v0 = vld [vmem:[%s22_s0] ss:$0 sm:$0xff] }
   0x2   :  { %5 = vst [vmem:[%s23_s1] sm:$0xf] %v4_v0 }

// kernel: tile.19
= control target key start
LH: loop header
LB: loop body
LE: loop exit
PB: predicated region body
PF: predicated region fallthrough
CT: control target
= control target key end

     0   :  { %vm7_vm0 = vcmask 261120   ;;  %s37_s8 = smov 32   ;;  %s38_s9 = smov 64   ;;  %vm13_vm1 = vcmask 1048320   ;;  %vm19_vm2 = vcmask 785920   ;;  %vm25_vm3 = vcmask 523520   ;;  %s55_s0 = inlined_call_operand.vmem [shape: f32[4,32], index: 0, kind: input, shape index: {}]   ;;  %s56_s1 = inlined_call_operand.vmem [shape: f32[1,128], index: 1, kind: output, shape index: {}]  }
   0x1   :  { %v4_v0 = vld [vmem:[%s55_s0] sm:$0xf]  ;;  %s36_s0 = smov 96  }
   0x2   :  { %5 = vst [vmem:[#allocation1] sm:$0xf] %v4_v0 }
   0x9   :  { %v10_v1 = vld [vmem:[#allocation1 + $0x3] sm:$0x1]   ;;  %v22_v2 = vld [vmem:[#allocation1 + $0x1] sm:$0x1]   ;;  %v6_v3 = vld [vmem:[#allocation1] sm:$0x1]  }
   0xa   :  { %11 = vrot.lane.b32.xlu0 %v10_v1, %s36_s0  ;;  %23 = vrot.lane.b32.xlu1 %v22_v2, %s37_s8  ;;  %v16_v4 = vld [vmem:[#allocation1 + $0x2] sm:$0x1]   ;;  %8 = vst.msk [vmem:[#allocation0] sm:$0x1] %vm7_vm0, %v6_v3  }
   0xe   :  { %17 = vrot.lane.b32.xlu0 %v16_v4, %s38_s9 }
  0x7c   :  { %v12_v5 = vpop.permute.xlu0 %11   ;;  %v24_v6 = vpop.permute.xlu1 %23  }
  0x7d   :  { %14 = vst.msk [vmem:[#allocation0] sm:$0x1] %vm13_vm1, %v12_v5  }
  0x80   :  { %v18_v7 = vpop.permute.xlu0 %17  }
  0x81   :  { %20 = vst.msk [vmem:[#allocation0] sm:$0x1] %vm19_vm2, %v18_v7  }
  0x82   :  { %26 = vst.msk [vmem:[#allocation0] sm:$0x1] %vm25_vm3, %v24_v6  }
  0x89   :  { %v30_v8 = vld [vmem:[#allocation0] sm:$0x1] }
  0x8a   :  { %32 = vst [vmem:[%s56_s1] sm:$0x1] %v30_v8 }

// kernel: tile.13
= control target key start
LH: loop header
LB: loop body
LE: loop exit
PB: predicated region body
PF: predicated region fallthrough
CT: control target
= control target key end

     0   :  { %s22_s0 = inlined_call_operand.vmem [shape: f32[128], index: 0, kind: input, shape index: {}]   ;;  %s23_s1 = inlined_call_operand.vmem [shape: f32[4,128], index: 1, kind: output, shape index: {}]  }
   0x1   :  { %v4_v0 = vld [vmem:[%s22_s0] ss:$0 sm:$0xff] }
   0x2   :  { %5 = vst [vmem:[%s23_s1] sm:$0xf] %v4_v0 }

// kernel: edge_encoder.1
= control target key start
LH: loop header
LB: loop body
LE: loop exit
PB: predicated region body
PF: predicated region fallthrough
CT: control target
= control target key end

     0   :  { %v611_v3 = vmov 0.0   ;;  %vm59_vm0 = vcmask 261120   ;;  %s896_s1 = inlined_call_operand.vmem [shape: f32[32,512], index: 1, kind: input, shape index: {}]   ;;  %s897_s3 = inlined_call_operand.vmem [shape: f32[512,128], index: 3, kind: input, shape index: {}]   ;;  %s898_s0 = inlined_call_operand.vmem [shape: f32[8,32], index: 0, kind: input, shape index: {}]   ;;  %s899_s2 = inlined_call_operand.vmem [shape: f32[1,512], index: 2, kind: input, shape index: {}]   ;;  %s900_s4 = inlined_call_operand.vmem [shape: f32[1,128], index: 4, kind: input, shape index: {}]   ;;  %s901_s5 = inlined_call_operand.vmem [shape: f32[8,128], index: 5, kind: output, shape index: {}]  }
   0x1   :  { %v22_v0 = vld [vmem:[%s896_s1 + $0x8] sm:$0xff]  ;;  %v24_v2 = vld [vmem:[%s896_s1 + $0x18] sm:$0xff]  ;;  %127 = vmatprep.mubr.f32.mxu0 %v611_v3  ;;  %198 = vmatprep.mubr.f32.mxu1 %v611_v3  ;;  %v21_v6 = vld [vmem:[%s896_s1] sm:$0xff] }
   0x2   :  { %v26_v1 = vld [vmem:[%s896_s1 + $0x28] sm:$0xff]  ;;  %v28_v5 = vld [vmem:[%s896_s1 + $0x38] sm:$0xff]  ;;  %v25_v7 = vld [vmem:[%s896_s1 + $0x20] sm:$0xff] }
   0x3   :  { %v522_v4 = vpack.c.bf16 %v26_v1, %v22_v0  ;;  %v530_v8 = vpack.c.bf16 %v28_v5, %v24_v2  ;;  %v524_v9 = vpack.c.bf16 %v25_v7, %v21_v6  ;;  %v23_v10 = vld [vmem:[%s896_s1 + $0x10] sm:$0xff]  ;;  %v30_v12 = vld [vmem:[%s896_s1 + $0x48] sm:$0xff]  ;;  %v32_v15 = vld [vmem:[%s896_s1 + $0x58] sm:$0xff] }
   0x4   :  { %v27_v11 = vld [vmem:[%s896_s1 + $0x30] sm:$0xff]  ;;  %v34_v14 = vld [vmem:[%s896_s1 + $0x68] sm:$0xff]  ;;  %v36_v16 = vld [vmem:[%s896_s1 + $0x78] sm:$0xff] }
   0x5   :  { %523 = vmatprep.subr.bf16.mxu0 %v522_v4  ;;  %v532_v13 = vpack.c.bf16 %v27_v11, %v23_v10  ;;  %531 = vmatprep.subr.bf16.mxu1 %v530_v8  ;;  %v526_v17 = vpack.c.bf16 %v34_v14, %v30_v12  ;;  %v534_v18 = vpack.c.bf16 %v36_v16, %v32_v15  ;;  %v29_v19 = vld [vmem:[%s896_s1 + $0x40] sm:$0xff]  ;;  %v31_v21 = vld [vmem:[%s896_s1 + $0x50] sm:$0xff]  ;;  %v246_v27 = vld [vmem:[%s897_s3 + $0x88] sm:$0xff] }
   0x6   :  { %525 = vmatpush1.bf16.msra.mxu0 %v524_v9  ;;  %v33_v20 = vld [vmem:[%s896_s1 + $0x60] sm:$0xff]  ;;  %v35_v23 = vld [vmem:[%s896_s1 + $0x70] sm:$0xff]  ;;  %v278_v29 = vld [vmem:[%s897_s3 + $0x188] sm:$0xff] }
   0x7   :  { %533 = vmatpush1.bf16.msra.mxu1 %v532_v13  ;;  %v528_v22 = vpack.c.bf16 %v33_v20, %v29_v19  ;;  %v245_v24 = vld [vmem:[%s897_s3 + $0x80] sm:$0xff]  ;;  %527 = vmatprep.subr.bf16.mxu0 %v526_v17  ;;  %v536_v25 = vpack.c.bf16 %v35_v23, %v31_v21  ;;  %v230_v33 = vld [vmem:[%s897_s3 + $0x8] sm:$0xff]  ;;  %v247_v37 = vld [vmem:[%s897_s3 + $0x90] sm:$0xff] }
   0x8   :  { %535 = vmatprep.subr.bf16.mxu1 %v534_v18  ;;  %v20_v26 = vld [vmem:[%s898_s0] sm:$0xff]  ;;  %v538_v30 = vpack.c.bf16 %v246_v27, %v245_v24  ;;  %v262_v36 = vld [vmem:[%s897_s3 + $0x108] sm:$0xff]  ;;  %v248_v38 = vld [vmem:[%s897_s3 + $0x98] sm:$0xff] }
   0x9   :  { %v277_v28 = vld [vmem:[%s897_s3 + $0x180] sm:$0xff]  ;;  %v542_v40 = vpack.c.bf16 %v248_v38, %v247_v37  ;;  %v279_v41 = vld [vmem:[%s897_s3 + $0x190] sm:$0xff]  ;;  %v280_v42 = vld [vmem:[%s897_s3 + $0x198] sm:$0xff] }
   0xa   :  { %v570_v31 = vpack.c.bf16 %v278_v29, %v277_v28  ;;  %v229_v32 = vld [vmem:[%s897_s3] sm:$0xff]  ;;  %529 = vmatpush1.bf16.msra.mxu0 %v528_v22  ;;  %v231_v43 = vld [vmem:[%s897_s3 + $0x10] sm:$0xff]  ;;  %v574_v44 = vpack.c.bf16 %v280_v42, %v279_v41  ;;  %v232_v45 = vld [vmem:[%s897_s3 + $0x18] sm:$0xff] }
   0xb   :  { %v261_v34 = vld [vmem:[%s897_s3 + $0x100] sm:$0xff]  ;;  %v540_v35 = vpack.c.bf16 %v230_v33, %v229_v32  ;;  %537 = vmatpush1.bf16.msra.mxu1 %v536_v25  ;;  %539 = vmatprep.subr.bf16.mxu0 %v538_v30  ;;  %v263_v46 = vld [vmem:[%s897_s3 + $0x110] sm:$0xff]  ;;  %v264_v47 = vld [vmem:[%s897_s3 + $0x118] sm:$0xff]  ;;  %v544_v51 = vpack.c.bf16 %v232_v45, %v231_v43 }
   0xc   :  { %v572_v39 = vpack.c.bf16 %v262_v36, %v261_v34  ;;  %571 = vmatprep.subr.bf16.mxu1 %v570_v31  ;;  %v249_v48 = vld [vmem:[%s897_s3 + $0xa0] sm:$0xff]  ;;  %v250_v49 = vld [vmem:[%s897_s3 + $0xa8] sm:$0xff]  ;;  %v576_v53 = vpack.c.bf16 %v264_v47, %v263_v46  ;;  %v251_v62 = vld [vmem:[%s897_s3 + $0xb0] sm:$0xff] }
   0xd   :  { %445 = vmatmul.mubr.msk.f32.vlgmr.msra.gmra.mrb[0].mxu0 %vm59_vm0, %v20_v26  ;;  %v281_v50 = vld [vmem:[%s897_s3 + $0x1a0] sm:$0xff]  ;;  %v282_v52 = vld [vmem:[%s897_s3 + $0x1a8] sm:$0xff]  ;;  %v546_v54 = vpack.c.bf16 %v250_v49, %v249_v48  ;;  %v252_v63 = vld [vmem:[%s897_s3 + $0xb8] sm:$0xff] }
   0xe   :  { %446 = vmatmul.mubr.msk.f32.vlgmr.msra.gmra.mrb[0].mxu1 %vm59_vm0, %v20_v26  ;;  %541 = vmatpush3.bf16.msra.mxu0 %v540_v35  ;;  %v578_v55 = vpack.c.bf16 %v282_v52, %v281_v50  ;;  %v233_v56 = vld [vmem:[%s897_s3 + $0x20] sm:$0xff]  ;;  %v234_v57 = vld [vmem:[%s897_s3 + $0x28] sm:$0xff]  ;;  %v283_v0 = vld [vmem:[%s897_s3 + $0x1b0] sm:$0xff]  ;;  %v550_v1 = vpack.c.bf16 %v252_v63, %v251_v62 }
   0xf   :  { %573 = vmatpush3.bf16.msra.mxu1 %v572_v39  ;;  %543 = vmatprep.subr.bf16.mxu0 %v542_v40  ;;  %v265_v58 = vld [vmem:[%s897_s3 + $0x120] sm:$0xff]  ;;  %v548_v59 = vpack.c.bf16 %v234_v57, %v233_v56  ;;  %v266_v60 = vld [vmem:[%s897_s3 + $0x128] sm:$0xff]  ;;  %v284_v2 = vld [vmem:[%s897_s3 + $0x1b8] sm:$0xff] }
  0x10   :  { %575 = vmatprep.subr.bf16.mxu1 %v574_v44  ;;  %v580_v61 = vpack.c.bf16 %v266_v60, %v265_v58  ;;  %v235_v3 = vld [vmem:[%s897_s3 + $0x30] sm:$0xff]  ;;  %v236_v4 = vld [vmem:[%s897_s3 + $0x38] sm:$0xff]  ;;  %v582_v5 = vpack.c.bf16 %v284_v2, %v283_v0  ;;  %v253_v10 = vld [vmem:[%s897_s3 + $0xc0] sm:$0xff]  ;;  %v39_v58 = vlaneseq }
  0x11   :  { %v552_v6 = vpack.c.bf16 %v236_v4, %v235_v3  ;;  %v267_v7 = vld [vmem:[%s897_s3 + $0x130] sm:$0xff]  ;;  %v268_v8 = vld [vmem:[%s897_s3 + $0x138] sm:$0xff]  ;;  %v254_v11 = vld [vmem:[%s897_s3 + $0xc8] sm:$0xff] }
  0x12   :  { %545 = vmatpush3.bf16.msra.mxu0 %v544_v51  ;;  %v584_v9 = vpack.c.bf16 %v268_v8, %v267_v7  ;;  %v285_v12 = vld [vmem:[%s897_s3 + $0x1c0] sm:$0xff]  ;;  %v554_v13 = vpack.c.bf16 %v254_v11, %v253_v10  ;;  %v286_v14 = vld [vmem:[%s897_s3 + $0x1c8] sm:$0xff]  ;;  %v255_v22 = vld [vmem:[%s897_s3 + $0xd0] sm:$0xff] }
  0x13   :  { %577 = vmatpush3.bf16.msra.mxu1 %v576_v53  ;;  %547 = vmatprep.subr.bf16.mxu0 %v546_v54  ;;  %v237_v15 = vld [vmem:[%s897_s3 + $0x40] sm:$0xff]  ;;  %v238_v16 = vld [vmem:[%s897_s3 + $0x48] sm:$0xff]  ;;  %v586_v17 = vpack.c.bf16 %v286_v14, %v285_v12  ;;  %v256_v23 = vld [vmem:[%s897_s3 + $0xd8] sm:$0xff] }
  0x14   :  { %579 = vmatprep.subr.bf16.mxu1 %v578_v55  ;;  %v556_v18 = vpack.c.bf16 %v238_v16, %v237_v15  ;;  %v269_v19 = vld [vmem:[%s897_s3 + $0x140] sm:$0xff]  ;;  %v270_v20 = vld [vmem:[%s897_s3 + $0x148] sm:$0xff]  ;;  %v287_v24 = vld [vmem:[%s897_s3 + $0x1d0] sm:$0xff]  ;;  %v558_v25 = vpack.c.bf16 %v256_v23, %v255_v22 }
  0x15   :  { %v588_v21 = vpack.c.bf16 %v270_v20, %v269_v19  ;;  %v288_v26 = vld [vmem:[%s897_s3 + $0x1d8] sm:$0xff]  ;;  %v239_v27 = vld [vmem:[%s897_s3 + $0x50] sm:$0xff]  ;;  %v257_v33 = vld [vmem:[%s897_s3 + $0xe0] sm:$0xff] }
  0x16   :  { %549 = vmatpush3.bf16.msra.mxu0 %v548_v59  ;;  %v240_v28 = vld [vmem:[%s897_s3 + $0x58] sm:$0xff]  ;;  %v590_v29 = vpack.c.bf16 %v288_v26, %v287_v24  ;;  %v271_v31 = vld [vmem:[%s897_s3 + $0x150] sm:$0xff]  ;;  %v258_v35 = vld [vmem:[%s897_s3 + $0xe8] sm:$0xff]  ;;  %v40_v59 = vshrl.u32 %v39_v58, 7 }
  0x17   :  { %581 = vmatpush3.bf16.msra.mxu1 %v580_v61  ;;  %551 = vmatprep.subr.bf16.mxu0 %v550_v1  ;;  %v560_v30 = vpack.c.bf16 %v240_v28, %v239_v27  ;;  %v272_v32 = vld [vmem:[%s897_s3 + $0x158] sm:$0xff]  ;;  %v289_v36 = vld [vmem:[%s897_s3 + $0x1e0] sm:$0xff]  ;;  %v290_v37 = vld [vmem:[%s897_s3 + $0x1e8] sm:$0xff]  ;;  %v562_v38 = vpack.c.bf16 %v258_v35, %v257_v33 }
  0x18   :  { %583 = vmatprep.subr.bf16.mxu1 %v582_v5  ;;  %v592_v34 = vpack.c.bf16 %v272_v32, %v271_v31  ;;  %v594_v39 = vpack.c.bf16 %v290_v37, %v289_v36  ;;  %v241_v40 = vld [vmem:[%s897_s3 + $0x60] sm:$0xff]  ;;  %v242_v41 = vld [vmem:[%s897_s3 + $0x68] sm:$0xff]  ;;  %v259_v45 = vld [vmem:[%s897_s3 + $0xf0] sm:$0xff]  ;;  %v41_v60 = vsub.s32 0, %v40_v59  ;;  %v49_v62 = vsub.s32 2, %v40_v59 }
  0x19   :  { %v273_v42 = vld [vmem:[%s897_s3 + $0x160] sm:$0xff]  ;;  %v564_v43 = vpack.c.bf16 %v242_v41, %v241_v40  ;;  %v274_v44 = vld [vmem:[%s897_s3 + $0x168] sm:$0xff]  ;;  %v260_v46 = vld [vmem:[%s897_s3 + $0xf8] sm:$0xff]  ;;  %v45_v63 = vsub.s32 1, %v40_v59  ;;  %v53_v0 = vsub.s32 3, %v40_v59 }
  0x1a   :  { %553 = vmatpush3.bf16.msra.mxu0 %v552_v6  ;;  %v596_v47 = vpack.c.bf16 %v274_v44, %v273_v42  ;;  %v566_v48 = vpack.c.bf16 %v260_v46, %v259_v45  ;;  %v291_v49 = vld [vmem:[%s897_s3 + $0x1f0] sm:$0xff]  ;;  %v292_v50 = vld [vmem:[%s897_s3 + $0x1f8] sm:$0xff]  ;;  %v37_v61 = vld [vmem:[%s899_s2] sm:$0xf] }
  0x1b   :  { %585 = vmatpush3.bf16.msra.mxu1 %v584_v9  ;;  %555 = vmatprep.subr.bf16.mxu0 %v554_v13  ;;  %v243_v51 = vld [vmem:[%s897_s3 + $0x70] sm:$0xff]  ;;  %v598_v52 = vpack.c.bf16 %v292_v50, %v291_v49  ;;  %v244_v53 = vld [vmem:[%s897_s3 + $0x78] sm:$0xff]  ;;  %v42_v1 = vrot.slane %v37_v61, %v41_v60  ;;  %v50_v2 = vrot.slane %v37_v61, %v49_v62  ;;  %v451_v35 = vld [vmem:[%s900_s4] ss:$0 sm:$0xff] }
  0x1c   :  { %587 = vmatprep.subr.bf16.mxu1 %v586_v17  ;;  %v275_v54 = vld [vmem:[%s897_s3 + $0x170] sm:$0xff]  ;;  %v276_v55 = vld [vmem:[%s897_s3 + $0x178] sm:$0xff]  ;;  %v568_v56 = vpack.c.bf16 %v244_v53, %v243_v51  ;;  %v46_v3 = vrot.slane %v37_v61, %v45_v63  ;;  %v54_v4 = vrot.slane %v37_v61, %v53_v0 }
  0x1d   :  { %v600_v57 = vpack.c.bf16 %v276_v55, %v275_v54 }
  0x1e   :  { %557 = vmatpush3.bf16.msra.mxu0 %v556_v18 }
  0x1f   :  { %589 = vmatpush3.bf16.msra.mxu1 %v588_v21  ;;  %559 = vmatprep.subr.bf16.mxu0 %v558_v25 }
  0x20   :  { %591 = vmatprep.subr.bf16.mxu1 %v590_v29 }
  0x22   :  { %561 = vmatpush3.bf16.msra.mxu0 %v560_v30 }
  0x23   :  { %593 = vmatpush3.bf16.msra.mxu1 %v592_v34  ;;  %563 = vmatprep.subr.bf16.mxu0 %v562_v38 }
  0x24   :  { %595 = vmatprep.subr.bf16.mxu1 %v594_v39 }
  0x26   :  { %565 = vmatpush3.bf16.msra.mxu0 %v564_v43 }
  0x27   :  { %597 = vmatpush3.bf16.msra.mxu1 %v596_v47  ;;  %567 = vmatprep.subr.bf16.mxu0 %v566_v48 }
  0x28   :  { %599 = vmatprep.subr.bf16.mxu1 %v598_v52 }
  0x2a   :  { %569 = vmatpush3.bf16.msra.mxu0 %v568_v56 }
  0x2b   :  { %601 = vmatpush3.bf16.msra.mxu1 %v600_v57 }
  0xe0   :  { %v129_v5 = vpop.f32.mrb[0].mxu0 }
  0xe1   :  { %v130_v6 = vadd.f32 %v129_v5, %v42_v1  ;;  %v200_v7 = vpop.f32.mrb[0].mxu1  ;;  %v131_v8 = vpop.f32.mrb[1].mxu0 }
  0xe2   :  { %v201_v9 = vadd.f32 %v200_v7, %v50_v2  ;;  %v132_v10 = vadd.f32 %v131_v8, %v46_v3  ;;  %v202_v11 = vpop.f32.mrb[1].mxu1 }
  0xe3   :  { %v209_v12 = vmin.f32 %v130_v6, 0.0  ;;  %v203_v13 = vadd.f32 %v202_v11, %v54_v4  ;;  %vm205_vm2 = vcmp.gt.f32.partialorder %v130_v6, 0.0 }
  0xe4   :  { %v211_v14 = vmin.f32 %v201_v9, 0.0  ;;  %v210_v15 = vmin.f32 %v132_v10, 0.0  ;;  %vm206_vm1 = vcmp.gt.f32.partialorder %v132_v10, 0.0  ;;  %vm207_vm4 = vcmp.gt.f32.partialorder %v201_v9, 0.0 }
  0xe5   :  { %v213_v16 = vmul.f32 1.442695, %v209_v12  ;;  %v212_v17 = vmin.f32 %v203_v13, 0.0  ;;  %vm208_vm3 = vcmp.gt.f32.partialorder %v203_v13, 0.0 }
  0xe6   :  { %v217_v18 = vmul.f32 1.442695, %v211_v14  ;;  %v215_v19 = vmul.f32 1.442695, %v210_v15 }
  0xe7   :  { %603 = vpow2.f32 %v213_v16  ;;  %v219_v20 = vmul.f32 1.442695, %v212_v17 }
  0xe8   :  { %605 = vpow2.f32 %v217_v18 }
  0xe9   :  { %607 = vpow2.f32 %v215_v19 }
  0xea   :  { %609 = vpow2.f32 %v219_v20 }
  0xf1   :  { %v604_v21 = vpop.eup %603 }
  0xf2   :  { %v606_v22 = vpop.eup %605  ;;  %v447_v24 = vadd.f32 -1.0, %v604_v21 }
  0xf3   :  { %v608_v23 = vpop.eup %607  ;;  %v449_v27 = vadd.f32 -1.0, %v606_v22 }
  0xf4   :  { %v610_v25 = vpop.eup %609  ;;  %v448_v26 = vadd.f32 -1.0, %v608_v23  ;;  %v225_v31 = vsel %vm205_vm2, %v130_v6, %v447_v24 }
  0xf5   :  { %v450_v28 = vadd.f32 -1.0, %v610_v25  ;;  %v227_v32 = vsel %vm207_vm4, %v201_v9, %v449_v27 }
  0xf6   :  { %v226_v29 = vsel %vm206_vm1, %v132_v10, %v448_v26 }
  0xf7   :  { %364 = vmatprep.mubr.f32.mxu0 %v226_v29  ;;  %v228_v30 = vsel %vm208_vm3, %v203_v13, %v450_v28 }
  0xf8   :  { %434 = vmatprep.mubr.f32.mxu1 %v228_v30  ;;  %365 = vmatmul.mubr.f32.vlgmr.msra.gmra.mrb[2].mxu0 %v225_v31 }
  0xf9   :  { %435 = vmatmul.mubr.f32.vlgmr.msra.gmra.mrb[2].mxu1 %v227_v32 }
 0x1cb   :  { %v484_v33 = vpop.f32.mrb[2].mxu0 }
 0x1cc   :  { %v519_v34 = vpop.f32.mrb[2].mxu1  ;;  %v485_v36 = vpop.f32.mrb[3].mxu0 }
 0x1cd   :  { %v486_v37 = vadd.f32 %v485_v36, %v484_v33  ;;  %v520_v38 = vpop.f32.mrb[3].mxu1 }
 0x1ce   :  { %v521_v39 = vadd.f32 %v520_v38, %v519_v34 }
 0x1cf   :  { %v367_v40 = vadd.f32 %v486_v37, %v451_v35 }
 0x1d1   :  { %v437_v41 = vadd.f32 %v521_v39, %v367_v40 }
 0x1d3   :  { %440 = vst [vmem:[%s901_s5] sm:$0xff] %v437_v41 }

</bundles_post_ra>
